<compile_context>
chip_gen: v5e
topology: v5e:2x2
jax: 0.10.0
libtpu: 0.0.40
codegen_flags: <defaults>
</compile_context>

<pallas_src>
import functools

import jax
import jax.numpy as jnp
from jax.experimental import pallas as pl
from jax.experimental.pallas import tpu as pltpu

POWER_ITERATIONS = 1
EPS = 1e-12


# ----------------------------------------------------------------------------
# Kernel 1: power iteration -> updated u, v and 1/sigma (all f32, one block).
#   w_ref : (C_out, C_in*K*K)   u_ref : (1, C_out)   v_ref : (1, C_in*K*K)
# ----------------------------------------------------------------------------
def _sigma_kernel(w_ref, u_ref, v_ref, u_out_ref, v_out_ref, inv_sig_ref):
    w = w_ref[...].astype(jnp.float32)
    u = u_ref[...].astype(jnp.float32)
    v = v_ref[...].astype(jnp.float32)

    nrm2 = jnp.float32(0.0)
    for _ in range(POWER_ITERATIONS):
        # v = l2normalize(W^T u) == l2normalize(u @ W)
        v = jnp.dot(u, w, preferred_element_type=jnp.float32)          # (1, Wd)
        v = v * jax.lax.rsqrt(jnp.sum(v * v) + EPS)                    # EUP rsqrt
        # u = l2normalize(W v)
        wv = jax.lax.dot_general(v, w, (((1,), (1,)), ((), ())),
                                 preferred_element_type=jnp.float32)   # (1, C_out)
        nrm2 = jnp.sum(wv * wv)
        u = wv * jax.lax.rsqrt(nrm2 + EPS)

    # sigma = u . (W v) == ||W v|| since u = (W v)/||W v|| -> reuse nrm2.
    sigma = jnp.sqrt(nrm2)
    u_out_ref[...] = u
    v_out_ref[...] = v
    inv_sig_ref[...] = (1.0 / sigma).reshape(1, 1)     # exact reciprocal


def spectral_sigma(w2d, u, v):
    C_out, Wd = w2d.shape
    return pl.pallas_call(
        _sigma_kernel,
        out_shape=(
            jax.ShapeDtypeStruct((1, C_out), jnp.float32),
            jax.ShapeDtypeStruct((1, Wd), jnp.float32),
            jax.ShapeDtypeStruct((1, 1), jnp.float32),
        ),
        in_specs=[
            pl.BlockSpec((C_out, Wd), lambda: (0, 0)),
            pl.BlockSpec((1, C_out), lambda: (0, 0)),
            pl.BlockSpec((1, Wd), lambda: (0, 0)),
        ],
        out_specs=(
            pl.BlockSpec((1, C_out), lambda: (0, 0)),
            pl.BlockSpec((1, Wd), lambda: (0, 0)),
            pl.BlockSpec((1, 1), lambda: (0, 0)),
        ),
    )(w2d, u, v)


# ----------------------------------------------------------------------------
# Kernel 2: direct 3x3 conv (pad=1) from a row-flattened padded image tile.
#   inv_sig_ref : (1, 1) f32 scalar in SMEM
#   w_ref       : (K*K, C_out, C_in) bf16, grid-invariant
#   b_ref       : (C_out, 1) f32, grid-invariant
#   x_ref       : (C_in, flat_pad) bf16 -- padded image n, rows flattened
#   o_ref       : (C_out, out_cols) f32, out column index = h*(W+2) + w
#                 (columns w >= W per row are over-compute and discarded)
# ----------------------------------------------------------------------------
def _conv_kernel(inv_sig_ref, w_ref, b_ref, x_ref, o_ref, *, K, Wp, out_cols):
    c_out = w_ref.shape[1]
    acc = jnp.zeros((c_out, out_cols), jnp.float32)
    # 9 shifted MXU accumulations from the VMEM-resident tile: no im2col in HBM.
    for ki in range(K):
        for kj in range(K):
            off = ki * Wp + kj                          # static lane offset
            slab = x_ref[:, off:off + out_cols]         # (C_in, out_cols) bf16
            wk = w_ref[ki * K + kj]                     # (C_out, C_in) bf16
            acc = acc + jnp.dot(wk, slab, preferred_element_type=jnp.float32)
    inv_sigma = inv_sig_ref[0, 0]                       # scalar from SMEM
    o_ref[...] = acc * inv_sigma + b_ref[...]           # spectral scale + bias


def spectral_norm_conv_forward(x, w_bar, bias, u, v):
    """Forward of SpectralNorm(Conv2d(C_in, C_out, 3, stride=1, padding=1))."""
    N, C_in, H, W = x.shape
    C_out, _, K, _ = w_bar.shape
    Wp = W + 2                                  # padded row width (pad=1 each side)
    out_cols = H * Wp                           # lane-dense output columns per image
    flat = (H + 2) * Wp
    # Need flat_pad >= out_cols + (K-1)*(Wp+1); round up to a multiple of 128.
    flat_pad = ((out_cols + (K - 1) * (Wp + 1) + 127) // 128) * 128

    # ---- kernel 1: u, v, 1/sigma (f32; no normalized-weight HBM round-trip) ----
    w2d = w_bar.reshape(C_out, C_in * K * K).astype(jnp.float32)
    u_new, v_new, inv_sigma = spectral_sigma(w2d, u, v)

    # ---- kernel 2: direct conv, bf16 matmul path, f32 accumulation -------------
    xp = jnp.pad(x.astype(jnp.bfloat16), ((0, 0), (0, 0), (1, 1), (1, 1)))
    xf = xp.reshape(N, C_in, flat)
    xf = jnp.pad(xf, ((0, 0), (0, 0), (0, flat_pad - flat)))
    w_kk = jnp.transpose(w_bar, (2, 3, 0, 1)).reshape(K * K, C_out, C_in)
    w_kk = w_kk.astype(jnp.bfloat16)            # tiny; bf16 for the MXU path
    b2 = bias.reshape(C_out, 1).astype(jnp.float32)

    kernel = functools.partial(_conv_kernel, K=K, Wp=Wp, out_cols=out_cols)
    out3 = pl.pallas_call(
        kernel,
        grid=(N,),
        out_shape=jax.ShapeDtypeStruct((N, C_out, out_cols), jnp.float32),
        in_specs=[
            pl.BlockSpec(memory_space=pltpu.MemorySpace.SMEM),            # 1/sigma
            pl.BlockSpec((K * K, C_out, C_in), lambda n: (0, 0, 0)),       # weights
            pl.BlockSpec((C_out, 1), lambda n: (0, 0)),                    # bias
            pl.BlockSpec((None, C_in, flat_pad), lambda n: (n, 0, 0)),     # image n
        ],
        out_specs=pl.BlockSpec((None, C_out, out_cols), lambda n: (n, 0, 0)),
        compiler_params=pltpu.CompilerParams(
            dimension_semantics=("parallel",),      # shards batch across v7x's 2 TCs
            vmem_limit_bytes=32 * 1024 * 1024,      # safe on v5e/v6e/v7x; tiles are KB
        ),
    )(inv_sigma, w_kk, b2, xf)

    # (N, C_out, H*Wp) -> (N, C_out, H, Wp) -> drop the 2 over-compute columns.
    out = out3.reshape(N, C_out, H, Wp)[..., :W]
    return out, u_new, v_new


def l2normalize(x, eps=EPS):
    return x / (jnp.linalg.norm(x) + eps)


if __name__ == "__main__":
    # Wrapped module: nn.Conv2d(4, 8, kernel_size=3, stride=1, padding=1)
    N, C_in, H, W = 2, 4, 16, 16
    C_out, K = 8, 3

    key = jax.random.PRNGKey(0)
    kx, kw, kb, ku, kv = jax.random.split(key, 5)

    x = jax.random.normal(kx, (N, C_in, H, W), dtype=jnp.float32)
    w_bar = jax.random.normal(kw, (C_out, C_in, K, K), dtype=jnp.float32) * 0.1
    bias = jax.random.normal(kb, (C_out,), dtype=jnp.float32) * 0.1
    # u, v initialized ~N(0,1) then l2-normalized, as in _make_params()
    u0 = l2normalize(jax.random.normal(ku, (C_out,), dtype=jnp.float32)).reshape(1, C_out)
    v0 = l2normalize(jax.random.normal(kv, (C_in * K * K,), dtype=jnp.float32)).reshape(1, C_in * K * K)

    fwd = jax.jit(spectral_norm_conv_forward)
    out, u_new, v_new = fwd(x, w_bar, bias, u0, v0)
    jax.block_until_ready(out)

    # Pure-JAX f32 reference (same math as the PyTorch module).
    w2d = w_bar.reshape(C_out, -1)
    v_ref = l2normalize(u0[0] @ w2d)
    u_ref = l2normalize(w2d @ v_ref)
    sigma = jnp.dot(u_ref, w2d @ v_ref)
    wn_ref = w_bar / sigma
    out_ref = jax.lax.conv_general_dilated(
        x, wn_ref, window_strides=(1, 1), padding=((1, 1), (1, 1)),
        dimension_numbers=("NCHW", "OIHW", "NCHW"),
    ) + bias[None, :, None, None]

    assert out.shape == (N, C_out, H, W)
    # power iteration path is all-f32 -> tight tolerance
    assert jnp.max(jnp.abs(u_new[0] - u_ref)) < 1e-4
    assert jnp.max(jnp.abs(v_new[0] - v_ref)) < 1e-4
    # conv matmul path uses bf16 inputs (f32 accumulation) -> ~1e-2-scale tolerance
    assert jnp.max(jnp.abs(out - out_ref)) < 3e-2
    print("KERNEL_OK")
</pallas_src>

<mosaic_0001>
module attributes {stable_mosaic.version = 11 : i64} {
  func.func @_sigma_kernel(%arg0: memref<8x36xf32, #tpu.memory_space<vmem>>, %arg1: memref<1x8xf32, #tpu.memory_space<vmem>>, %arg2: memref<1x36xf32, #tpu.memory_space<vmem>>, %arg3: memref<1x8xf32, #tpu.memory_space<vmem>>, %arg4: memref<1x36xf32, #tpu.memory_space<vmem>>, %arg5: memref<1x1xf32, #tpu.memory_space<vmem>>) attributes {dimension_semantics = [], scalar_prefetch = 0 : i64, scratch_operands = 0 : i64, tpu.core_type = #tpu.core_type<tc>} {
    %c0 = arith.constant 0 : index
    %c0_0 = arith.constant 0 : index
    %0 = vector.load %arg0[%c0, %c0_0] : memref<8x36xf32, #tpu.memory_space<vmem>>, vector<8x36xf32>
    %c0_1 = arith.constant 0 : index
    %c0_2 = arith.constant 0 : index
    %1 = vector.load %arg1[%c0_1, %c0_2] : memref<1x8xf32, #tpu.memory_space<vmem>>, vector<1x8xf32>
    %cst = arith.constant dense<0.000000e+00> : vector<1x36xf32>
    %2 = tpu.matmul %1, %0, %cst {dimension_numbers = #tpu.dot_dimension_numbers<[1], [0], [0], [1], [0, 0, 1, 1], [], []>} : vector<1x8xf32>, vector<8x36xf32>, vector<1x36xf32> -> vector<1x36xf32>
    %3 = arith.mulf %2, %2 : vector<1x36xf32>
    %4 = vector.shape_cast %3 : vector<1x36xf32> to vector<1x1x36xf32>
    %cst_3 = arith.constant dense<0.000000e+00> : vector<1xf32>
    %5 = vector.multi_reduction <add>, %4, %cst_3 [1, 2] : vector<1x1x36xf32> to vector<1xf32>
    %6 = vector.shape_cast %5 : vector<1xf32> to vector<1x1x1xf32>
    %7 = vector.extract %6[0, 0, 0] : f32 from vector<1x1x1xf32>
    %cst_4 = arith.constant 9.99999996E-13 : f32
    %8 = arith.addf %7, %cst_4 : f32
    %9 = math.rsqrt %8 : f32
    %10 = vector.broadcast %9 : f32 to vector<1x36xf32>
    %11 = arith.mulf %2, %10 : vector<1x36xf32>
    %cst_5 = arith.constant dense<0.000000e+00> : vector<1x8xf32>
    %12 = tpu.matmul %11, %0, %cst_5 {dimension_numbers = #tpu.dot_dimension_numbers<[1], [1], [0], [0], [0, 0, 1, 0], [], []>} : vector<1x36xf32>, vector<8x36xf32>, vector<1x8xf32> -> vector<1x8xf32>
    %13 = arith.mulf %12, %12 : vector<1x8xf32>
    %14 = vector.shape_cast %13 : vector<1x8xf32> to vector<1x1x8xf32>
    %cst_6 = arith.constant dense<0.000000e+00> : vector<1xf32>
    %15 = vector.multi_reduction <add>, %14, %cst_6 [1, 2] : vector<1x1x8xf32> to vector<1xf32>
    %16 = vector.shape_cast %15 : vector<1xf32> to vector<1x1x1xf32>
    %17 = vector.extract %16[0, 0, 0] : f32 from vector<1x1x1xf32>
    %cst_7 = arith.constant 9.99999996E-13 : f32
    %18 = arith.addf %17, %cst_7 : f32
    %19 = math.rsqrt %18 : f32
    %20 = vector.broadcast %19 : f32 to vector<1x8xf32>
    %21 = arith.mulf %12, %20 : vector<1x8xf32>
    %22 = math.sqrt %17 : f32
    %c0_8 = arith.constant 0 : index
    %c0_9 = arith.constant 0 : index
    %23 = vector.load %arg3[%c0_8, %c0_9] : memref<1x8xf32, #tpu.memory_space<vmem>>, vector<1x8xf32>
    tpu.vector_store %arg3[%c0_8, %c0_9], %21 {strides = array<i32>} : memref<1x8xf32, #tpu.memory_space<vmem>>, vector<1x8xf32>,
    %c0_10 = arith.constant 0 : index
    %c0_11 = arith.constant 0 : index
    %24 = vector.load %arg4[%c0_10, %c0_11] : memref<1x36xf32, #tpu.memory_space<vmem>>, vector<1x36xf32>
    tpu.vector_store %arg4[%c0_10, %c0_11], %11 {strides = array<i32>} : memref<1x36xf32, #tpu.memory_space<vmem>>, vector<1x36xf32>,
    %cst_12 = arith.constant 1.000000e+00 : f32
    %25 = arith.divf %cst_12, %22 : f32
    %26 = vector.broadcast %25 : f32 to vector<1x1xf32>
    %c0_13 = arith.constant 0 : index
    %c0_14 = arith.constant 0 : index
    %27 = vector.load %arg5[%c0_13, %c0_14] : memref<1x1xf32, #tpu.memory_space<vmem>>, vector<1x1xf32>
    tpu.vector_store %arg5[%c0_13, %c0_14], %26 {strides = array<i32>} : memref<1x1xf32, #tpu.memory_space<vmem>>, vector<1x1xf32>,
    return
  }
}

module attributes {stable_mosaic.version = 11 : i64} {
  func.func @_conv_kernel(%arg0: i32, %arg1: memref<1x1xf32, #tpu.memory_space<smem>>, %arg2: memref<9x8x4xbf16, #tpu.memory_space<vmem>>, %arg3: memref<8x1xf32, #tpu.memory_space<vmem>>, %arg4: memref<1x4x384xbf16, #tpu.memory_space<vmem>>, %arg5: memref<1x8x288xf32, #tpu.memory_space<vmem>>) attributes {dimension_semantics = [#tpu.dimension_semantics<parallel>], iteration_bounds = array<i64: 2>, scalar_prefetch = 0 : i64, scratch_operands = 0 : i64, tpu.core_type = #tpu.core_type<tc>, window_params = [{transform_indices = @transform_0, window_bounds = array<i64: 1, 1>}, {pipeline_mode = #tpu.pipeline_mode<synchronous>, transform_indices = @transform_1, window_bounds = array<i64: 9, 8, 4>}, {pipeline_mode = #tpu.pipeline_mode<synchronous>, transform_indices = @transform_2, window_bounds = array<i64: 8, 1>}, {transform_indices = @transform_3, window_bounds = array<i64: 1, 4, 384>}, {transform_indices = @transform_4, window_bounds = array<i64: 1, 8, 288>}]} {
    %cst = arith.constant 0.000000e+00 : f32
    %0 = vector.broadcast %cst : f32 to vector<8x288xf32>
    %c0 = arith.constant 0 : index
    %c0_0 = arith.constant 0 : index
    %c0_1 = arith.constant 0 : index
    %1 = vector.load %arg4[%c0, %c0_0, %c0_1] : memref<1x4x384xbf16, #tpu.memory_space<vmem>>, vector<1x4x288xbf16>
    %2 = vector.shape_cast %1 : vector<1x4x288xbf16> to vector<4x288xbf16>
    %c0_2 = arith.constant 0 : index
    %c0_3 = arith.constant 0 : index
    %c0_4 = arith.constant 0 : index
    %3 = vector.load %arg2[%c0_2, %c0_3, %c0_4] : memref<9x8x4xbf16, #tpu.memory_space<vmem>>, vector<1x8x4xbf16>
    %4 = vector.shape_cast %3 : vector<1x8x4xbf16> to vector<8x4xbf16>
    %cst_5 = arith.constant dense<0.000000e+00> : vector<8x288xf32>
    %5 = tpu.matmul %4, %2, %cst_5 {dimension_numbers = #tpu.dot_dimension_numbers<[1], [0], [0], [1], [0, 0, 1, 1], [], []>} : vector<8x4xbf16>, vector<4x288xbf16>, vector<8x288xf32> -> vector<8x288xf32>
    %6 = arith.addf %0, %5 : vector<8x288xf32>
    %c0_6 = arith.constant 0 : index
    %c0_7 = arith.constant 0 : index
    %c1 = arith.constant 1 : index
    %7 = vector.load %arg4[%c0_6, %c0_7, %c1] : memref<1x4x384xbf16, #tpu.memory_space<vmem>>, vector<1x4x288xbf16>
    %8 = vector.shape_cast %7 : vector<1x4x288xbf16> to vector<4x288xbf16>
    %c1_8 = arith.constant 1 : index
    %c0_9 = arith.constant 0 : index
    %c0_10 = arith.constant 0 : index
    %9 = vector.load %arg2[%c1_8, %c0_9, %c0_10] : memref<9x8x4xbf16, #tpu.memory_space<vmem>>, vector<1x8x4xbf16>
    %10 = vector.shape_cast %9 : vector<1x8x4xbf16> to vector<8x4xbf16>
    %cst_11 = arith.constant dense<0.000000e+00> : vector<8x288xf32>
    %11 = tpu.matmul %10, %8, %cst_11 {dimension_numbers = #tpu.dot_dimension_numbers<[1], [0], [0], [1], [0, 0, 1, 1], [], []>} : vector<8x4xbf16>, vector<4x288xbf16>, vector<8x288xf32> -> vector<8x288xf32>
    %12 = arith.addf %6, %11 : vector<8x288xf32>
    %c0_12 = arith.constant 0 : index
    %c0_13 = arith.constant 0 : index
    %c2 = arith.constant 2 : index
    %13 = vector.load %arg4[%c0_12, %c0_13, %c2] : memref<1x4x384xbf16, #tpu.memory_space<vmem>>, vector<1x4x288xbf16>
    %14 = vector.shape_cast %13 : vector<1x4x288xbf16> to vector<4x288xbf16>
    %c2_14 = arith.constant 2 : index
    %c0_15 = arith.constant 0 : index
    %c0_16 = arith.constant 0 : index
    %15 = vector.load %arg2[%c2_14, %c0_15, %c0_16] : memref<9x8x4xbf16, #tpu.memory_space<vmem>>, vector<1x8x4xbf16>
    %16 = vector.shape_cast %15 : vector<1x8x4xbf16> to vector<8x4xbf16>
    %cst_17 = arith.constant dense<0.000000e+00> : vector<8x288xf32>
    %17 = tpu.matmul %16, %14, %cst_17 {dimension_numbers = #tpu.dot_dimension_numbers<[1], [0], [0], [1], [0, 0, 1, 1], [], []>} : vector<8x4xbf16>, vector<4x288xbf16>, vector<8x288xf32> -> vector<8x288xf32>
    %18 = arith.addf %12, %17 : vector<8x288xf32>
    %c0_18 = arith.constant 0 : index
    %c0_19 = arith.constant 0 : index
    %c18 = arith.constant 18 : index
    %19 = vector.load %arg4[%c0_18, %c0_19, %c18] : memref<1x4x384xbf16, #tpu.memory_space<vmem>>, vector<1x4x288xbf16>
    %20 = vector.shape_cast %19 : vector<1x4x288xbf16> to vector<4x288xbf16>
    %c3 = arith.constant 3 : index
    %c0_20 = arith.constant 0 : index
    %c0_21 = arith.constant 0 : index
    %21 = vector.load %arg2[%c3, %c0_20, %c0_21] : memref<9x8x4xbf16, #tpu.memory_space<vmem>>, vector<1x8x4xbf16>
    %22 = vector.shape_cast %21 : vector<1x8x4xbf16> to vector<8x4xbf16>
    %cst_22 = arith.constant dense<0.000000e+00> : vector<8x288xf32>
    %23 = tpu.matmul %22, %20, %cst_22 {dimension_numbers = #tpu.dot_dimension_numbers<[1], [0], [0], [1], [0, 0, 1, 1], [], []>} : vector<8x4xbf16>, vector<4x288xbf16>, vector<8x288xf32> -> vector<8x288xf32>
    %24 = arith.addf %18, %23 : vector<8x288xf32>
    %c0_23 = arith.constant 0 : index
    %c0_24 = arith.constant 0 : index
    %c19 = arith.constant 19 : index
    %25 = vector.load %arg4[%c0_23, %c0_24, %c19] : memref<1x4x384xbf16, #tpu.memory_space<vmem>>, vector<1x4x288xbf16>
    %26 = vector.shape_cast %25 : vector<1x4x288xbf16> to vector<4x288xbf16>
    %c4 = arith.constant 4 : index
    %c0_25 = arith.constant 0 : index
    %c0_26 = arith.constant 0 : index
    %27 = vector.load %arg2[%c4, %c0_25, %c0_26] : memref<9x8x4xbf16, #tpu.memory_space<vmem>>, vector<1x8x4xbf16>
    %28 = vector.shape_cast %27 : vector<1x8x4xbf16> to vector<8x4xbf16>
    %cst_27 = arith.constant dense<0.000000e+00> : vector<8x288xf32>
    %29 = tpu.matmul %28, %26, %cst_27 {dimension_numbers = #tpu.dot_dimension_numbers<[1], [0], [0], [1], [0, 0, 1, 1], [], []>} : vector<8x4xbf16>, vector<4x288xbf16>, vector<8x288xf32> -> vector<8x288xf32>
    %30 = arith.addf %24, %29 : vector<8x288xf32>
    %c0_28 = arith.constant 0 : index
    %c0_29 = arith.constant 0 : index
    %c20 = arith.constant 20 : index
    %31 = vector.load %arg4[%c0_28, %c0_29, %c20] : memref<1x4x384xbf16, #tpu.memory_space<vmem>>, vector<1x4x288xbf16>
    %32 = vector.shape_cast %31 : vector<1x4x288xbf16> to vector<4x288xbf16>
    %c5 = arith.constant 5 : index
    %c0_30 = arith.constant 0 : index
    %c0_31 = arith.constant 0 : index
    %33 = vector.load %arg2[%c5, %c0_30, %c0_31] : memref<9x8x4xbf16, #tpu.memory_space<vmem>>, vector<1x8x4xbf16>
    %34 = vector.shape_cast %33 : vector<1x8x4xbf16> to vector<8x4xbf16>
    %cst_32 = arith.constant dense<0.000000e+00> : vector<8x288xf32>
    %35 = tpu.matmul %34, %32, %cst_32 {dimension_numbers = #tpu.dot_dimension_numbers<[1], [0], [0], [1], [0, 0, 1, 1], [], []>} : vector<8x4xbf16>, vector<4x288xbf16>, vector<8x288xf32> -> vector<8x288xf32>
    %36 = arith.addf %30, %35 : vector<8x288xf32>
    %c0_33 = arith.constant 0 : index
    %c0_34 = arith.constant 0 : index
    %c36 = arith.constant 36 : index
    %37 = vector.load %arg4[%c0_33, %c0_34, %c36] : memref<1x4x384xbf16, #tpu.memory_space<vmem>>, vector<1x4x288xbf16>
    %38 = vector.shape_cast %37 : vector<1x4x288xbf16> to vector<4x288xbf16>
    %c6 = arith.constant 6 : index
    %c0_35 = arith.constant 0 : index
    %c0_36 = arith.constant 0 : index
    %39 = vector.load %arg2[%c6, %c0_35, %c0_36] : memref<9x8x4xbf16, #tpu.memory_space<vmem>>, vector<1x8x4xbf16>
    %40 = vector.shape_cast %39 : vector<1x8x4xbf16> to vector<8x4xbf16>
    %cst_37 = arith.constant dense<0.000000e+00> : vector<8x288xf32>
    %41 = tpu.matmul %40, %38, %cst_37 {dimension_numbers = #tpu.dot_dimension_numbers<[1], [0], [0], [1], [0, 0, 1, 1], [], []>} : vector<8x4xbf16>, vector<4x288xbf16>, vector<8x288xf32> -> vector<8x288xf32>
    %42 = arith.addf %36, %41 : vector<8x288xf32>
    %c0_38 = arith.constant 0 : index
    %c0_39 = arith.constant 0 : index
    %c37 = arith.constant 37 : index
    %43 = vector.load %arg4[%c0_38, %c0_39, %c37] : memref<1x4x384xbf16, #tpu.memory_space<vmem>>, vector<1x4x288xbf16>
    %44 = vector.shape_cast %43 : vector<1x4x288xbf16> to vector<4x288xbf16>
    %c7 = arith.constant 7 : index
    %c0_40 = arith.constant 0 : index
    %c0_41 = arith.constant 0 : index
    %45 = vector.load %arg2[%c7, %c0_40, %c0_41] : memref<9x8x4xbf16, #tpu.memory_space<vmem>>, vector<1x8x4xbf16>
    %46 = vector.shape_cast %45 : vector<1x8x4xbf16> to vector<8x4xbf16>
    %cst_42 = arith.constant dense<0.000000e+00> : vector<8x288xf32>
    %47 = tpu.matmul %46, %44, %cst_42 {dimension_numbers = #tpu.dot_dimension_numbers<[1], [0], [0], [1], [0, 0, 1, 1], [], []>} : vector<8x4xbf16>, vector<4x288xbf16>, vector<8x288xf32> -> vector<8x288xf32>
    %48 = arith.addf %42, %47 : vector<8x288xf32>
    %c0_43 = arith.constant 0 : index
    %c0_44 = arith.constant 0 : index
    %c38 = arith.constant 38 : index
    %49 = vector.load %arg4[%c0_43, %c0_44, %c38] : memref<1x4x384xbf16, #tpu.memory_space<vmem>>, vector<1x4x288xbf16>
    %50 = vector.shape_cast %49 : vector<1x4x288xbf16> to vector<4x288xbf16>
    %c8 = arith.constant 8 : index
    %c0_45 = arith.constant 0 : index
    %c0_46 = arith.constant 0 : index
    %51 = vector.load %arg2[%c8, %c0_45, %c0_46] : memref<9x8x4xbf16, #tpu.memory_space<vmem>>, vector<1x8x4xbf16>
    %52 = vector.shape_cast %51 : vector<1x8x4xbf16> to vector<8x4xbf16>
    %cst_47 = arith.constant dense<0.000000e+00> : vector<8x288xf32>
    %53 = tpu.matmul %52, %50, %cst_47 {dimension_numbers = #tpu.dot_dimension_numbers<[1], [0], [0], [1], [0, 0, 1, 1], [], []>} : vector<8x4xbf16>, vector<4x288xbf16>, vector<8x288xf32> -> vector<8x288xf32>
    %54 = arith.addf %48, %53 : vector<8x288xf32>
    %c0_48 = arith.constant 0 : index
    %c0_49 = arith.constant 0 : index
    %55 = memref.load %arg1[%c0_48, %c0_49] : memref<1x1xf32, #tpu.memory_space<smem>>
    %56 = vector.broadcast %55 : f32 to vector<8x288xf32>
    %57 = arith.mulf %54, %56 : vector<8x288xf32>
    %c0_50 = arith.constant 0 : index
    %c0_51 = arith.constant 0 : index
    %58 = vector.load %arg3[%c0_50, %c0_51] : memref<8x1xf32, #tpu.memory_space<vmem>>, vector<8x1xf32>
    %59 = vector.broadcast %58 : vector<8x1xf32> to vector<8x288xf32>
    %60 = arith.addf %57, %59 : vector<8x288xf32>
    %c0_52 = arith.constant 0 : index
    %c0_53 = arith.constant 0 : index
    %c0_54 = arith.constant 0 : index
    %61 = vector.load %arg5[%c0_52, %c0_53, %c0_54] : memref<1x8x288xf32, #tpu.memory_space<vmem>>, vector<1x8x288xf32>
    %62 = vector.shape_cast %61 : vector<1x8x288xf32> to vector<8x288xf32>
    %63 = vector.shape_cast %60 : vector<8x288xf32> to vector<1x8x288xf32>
    tpu.vector_store %arg5[%c0_52, %c0_53, %c0_54], %63 {strides = array<i32>} : memref<1x8x288xf32, #tpu.memory_space<vmem>>, vector<1x8x288xf32>,
    return
  }
  func.func @transform_0(%arg0: i32) -> (i32, i32) {
    %c0_i32 = arith.constant 0 : i32
    %c0_i32_0 = arith.constant 0 : i32
    %c0_i32_1 = arith.constant 0 : i32
    return %c0_i32, %c0_i32_0 : i32, i32
  }
  func.func @transform_1(%arg0: i32) -> (i32, i32, i32) {
    %c0_i32 = arith.constant 0 : i32
    %c0_i32_0 = arith.constant 0 : i32
    %c0_i32_1 = arith.constant 0 : i32
    %c0_i32_2 = arith.constant 0 : i32
    return %c0_i32, %c0_i32_0, %c0_i32_1 : i32, i32, i32
  }
  func.func @transform_2(%arg0: i32) -> (i32, i32) {
    %c0_i32 = arith.constant 0 : i32
    %c0_i32_0 = arith.constant 0 : i32
    %c0_i32_1 = arith.constant 0 : i32
    return %c0_i32, %c0_i32_0 : i32, i32
  }
  func.func @transform_3(%arg0: i32) -> (i32, i32, i32) {
    %c0_i32 = arith.constant 0 : i32
    %c0_i32_0 = arith.constant 0 : i32
    %c0_i32_1 = arith.constant 0 : i32
    return %arg0, %c0_i32, %c0_i32_0 : i32, i32, i32
  }
  func.func @transform_4(%arg0: i32) -> (i32, i32, i32) {
    %c0_i32 = arith.constant 0 : i32
    %c0_i32_0 = arith.constant 0 : i32
    %c0_i32_1 = arith.constant 0 : i32
    return %arg0, %c0_i32, %c0_i32_0 : i32, i32, i32
  }
}

</mosaic_0001>

<bundles_post_ra>
// kernel: spectral_norm_conv_forward.2
= control target key start
LH: loop header
LB: loop body
LE: loop exit
PB: predicated region body
PF: predicated region fallthrough
CT: control target
= control target key end

     0   :  { %11 = vsyncpa [#allocation3], 0  ;;  %vm21_vm0 = vcmask 64512   ;;  %s362_s0 = inlined_call_operand.vmem [shape: f32[8,36], index: 0, kind: input, shape index: {}]   ;;  %s363_s1 = inlined_call_operand.vmem [shape: f32[1,8], index: 1, kind: input, shape index: {}]   ;;  %s364_s2 = inlined_call_operand.vmem [shape: f32[1,36], index: 2, kind: input, shape index: {}]   ;;  %s365_s3 = inlined_call_operand.hbm [shape: f32[1,8], index: 3, kind: output, shape index: {0}]   ;;  %s366_s4 = inlined_call_operand.hbm [shape: f32[1,36], index: 4, kind: output, shape index: {1}]   ;;  %s367_s5 = inlined_call_operand.hbm [shape: f32[1,1], index: 5, kind: output, shape index: {2}]  }
   0x1   :  { %v19_v0 = vld [vmem:[%s362_s0] sm:$0xff] }
   0x2   :  { %v20_v1 = vld [vmem:[%s363_s1] sm:$0x1] }
   0x3   :  { %12 = vsyncpa [#allocation5], 0  ;;  %40 = vmatpush.msra.mxu0 %v19_v0  ;;  %vm46_vm1 = vcmask 286720   ;;  %vm72_vm5 = vcmask 293888   ;;  %vm100_vm6 = vcmask 57344   ;;  %s310_s24 = smov [#allocation4]  }
   0x4   :  { %208 = vmatmul.msk.f32.vlgmr.msra.gmra.mxu0 %vm21_vm0, %v20_v1  ;;  %209 = vmatpush.xpose.msk.msra.mxu1 %vm72_vm5, %v19_v0  ;;  %s177_s25 = sshll.u32 %s310_s24, 4  ;;  %s179_s28 = sshll.u32 %s366_s4, 4  ;;  %vm159_vm0 = vcmask 0   ;;  %s178_s25 = int_to_ptr.vmem [resolvable:$true] %s177_s25  ;;  %s180_s28 = int_to_ptr.hbm [resolvable:$true] %s179_s28 }
   0x5   :  { %s311_s4 = smov [#allocation2]   ;;  %s168_s7 = sshll.u32 %s365_s3, 4  ;;  %s169_s7 = int_to_ptr.hbm [resolvable:$true] %s168_s7 }
   0x6   :  { %s166_s29 = sshll.u32 %s311_s4, 4  ;;  %s312_s3 = smov [#allocation6]   ;;  %s167_s29 = int_to_ptr.vmem [resolvable:$true] %s166_s29 }
   0x7   :  { %s188_s10 = sshll.u32 %s312_s3, 4  ;;  %s190_s13 = sshll.u32 %s367_s5, 4  ;;  %s189_s10 = int_to_ptr.vmem [resolvable:$true] %s188_s10  ;;  %s191_s13 = int_to_ptr.hbm [resolvable:$true] %s190_s13 }
  0x81   :  { %v42_v2 = vpop.f32.mrf.mxu0 }
  0x82   :  { %v45_v3 = vmul.f32 %v42_v2, %v42_v2 }
  0x84   :  { %v47_v4 = vsel %vm46_vm1, %v45_v3, 0.0 }
  0x85   :  { %48 = vadd.xlane.f32.xlu0 %v47_v4 }
  0xf8   :  { %v49_v5 = vpop.xlane.xlu0 %48 }
  0xf9   :  { %v50_v6 = vrot.slane %v49_v5, 4 }
  0xfb   :  { %v51_v7 = vadd.f32 %v50_v6, %v49_v5 }
  0xfd   :  { %v52_v8 = vrot.slane %v51_v7, 2 }
  0xff   :  { %v53_v9 = vadd.f32 %v52_v8, %v51_v7 }
 0x101   :  { %v54_v10 = vrot.slane %v53_v9, 1 }
 0x103   :  { %v55_v11 = vadd.f32 %v54_v10, %v53_v9 }
 0x105   :  { %211 = vpush %v55_v11 }
 0x136   :  { %s212_s0 = spop %211 }
 0x137   :  { %s57_s1 = sadd.f32 1e-12, %s212_s0 }
 0x139   :  { %v58_v12 = vstv %s57_s1 }
 0x13a   :  { %226 = vrsqrt.f32 %v58_v12  ;;  %vm65_vm3 = vweird.f32 %v58_v12 }
 0x140   :  { %v227_v13 = vpop.eup %226 }
 0x141   :  { %v60_v14 = vmul.f32 %v227_v13, %v58_v12  ;;  %vm66_vm2 = vweird.f32 %v227_v13 }
 0x142   :  { %vm67_vm4 = vmor %vm65_vm3, %vm66_vm2 }
 0x143   :  { %v61_v15 = vmul.f32 %v227_v13, %v60_v14 }
 0x145   :  { %v62_v16 = vmul.f32 0.5, %v61_v15 }
 0x147   :  { %v63_v17 = vsub.f32 1.5, %v62_v16 }
 0x149   :  { %v64_v18 = vmul.f32 %v227_v13, %v63_v17 }
 0x14b   :  { %v68_v19 = vsel %vm67_vm4, %v227_v13, %v64_v18 }
 0x14c   :  { %213 = vpush %v68_v19 }
 0x17d   :  { %s214_s2 = spop %213 }
 0x17e   :  { %v70_v20 = vstv %s214_s2 }
 0x17f   :  { %v71_v21 = vmul.f32 %v70_v20, %v42_v2 }
 0x181   :  { %141 = vst.msk [vmem:[#allocation4] sm:$0x1] %vm46_vm1, %v71_v21  ;;  %210 = vmatmul.msk.f32.vlgmr.msra.gmra.mxu1 %vm72_vm5, %v71_v21 }
 0x182   :  { %182 = dma.vmem_to_hbm [thread:$0]  %s178_s25, 16, %s180_s28, [#allocation5]  }
 0x1fe   :  { %v96_v22 = vpop.f32.mrf.mxu1 }
 0x1ff   :  { %v99_v23 = vmul.f32 %v96_v22, %v96_v22 }
 0x201   :  { %v101_v24 = vsel %vm100_vm6, %v99_v23, 0.0 }
 0x202   :  { %102 = vadd.xlane.f32.xlu0 %v101_v24 }
 0x275   :  { %v103_v25 = vpop.xlane.xlu0 %102 }
 0x276   :  { %v104_v26 = vrot.slane %v103_v25, 4 }
 0x278   :  { %v105_v27 = vadd.f32 %v104_v26, %v103_v25 }
 0x27a   :  { %v106_v28 = vrot.slane %v105_v27, 2 }
 0x27c   :  { %v107_v29 = vadd.f32 %v106_v28, %v105_v27 }
 0x27e   :  { %v108_v30 = vrot.slane %v107_v29, 1 }
 0x280   :  { %v109_v31 = vadd.f32 %v108_v30, %v107_v29 }
 0x282   :  { %215 = vpush %v109_v31 }
 0x2b3   :  { %s216_s22 = spop %215 }
 0x2b4   :  { %s111_s23 = sadd.f32 1e-12, %s216_s22  ;;  %v126_v32 = vstv %s216_s22 }
 0x2b5   :  { %228 = vrsqrt.f32 %v126_v32  ;;  %vm134_vm10 = vcmp.eq.f32.partialorder %v126_v32, inf  ;;  %v137_v47 = vand.u32 2147483648, %v126_v32  ;;  %vm136_vm11 = vcmp.eq.f32.partialorder %v126_v32, 0.0 }
 0x2b6   :  { %v112_v33 = vstv %s111_s23 }
 0x2b7   :  { %230 = vrsqrt.f32 %v112_v33  ;;  %vm119_vm8 = vweird.f32 %v112_v33 }
 0x2bb   :  { %v229_v34 = vpop.eup %228 }
 0x2bc   :  { %v128_v35 = vmul.f32 %v229_v34, %v126_v32 }
 0x2bd   :  { %v231_v36 = vpop.eup %230 }
 0x2be   :  { %v114_v37 = vmul.f32 %v231_v36, %v112_v33  ;;  %v129_v38 = vmul.f32 %v229_v34, %v128_v35  ;;  %vm120_vm7 = vweird.f32 %v231_v36 }
 0x2bf   :  { %vm121_vm9 = vmor %vm119_vm8, %vm120_vm7 }
 0x2c0   :  { %v115_v39 = vmul.f32 %v231_v36, %v114_v37  ;;  %v130_v40 = vmul.f32 0.5, %v129_v38 }
 0x2c2   :  { %v116_v41 = vmul.f32 0.5, %v115_v39  ;;  %v131_v42 = vsub.f32 1.5, %v130_v40 }
 0x2c4   :  { %v117_v43 = vsub.f32 1.5, %v116_v41  ;;  %v132_v44 = vmul.f32 %v229_v34, %v131_v42 }
 0x2c6   :  { %v118_v45 = vmul.f32 %v231_v36, %v117_v43  ;;  %v133_v46 = vmul.f32 %v132_v44, %v126_v32 }
 0x2c8   :  { %v122_v48 = vsel %vm121_vm9, %v231_v36, %v118_v45  ;;  %v135_v49 = vsel %vm134_vm10, %v126_v32, %v133_v46 }
 0x2c9   :  { %217 = vpush %v122_v48  ;;  %v138_v50 = vsel %vm136_vm11, %v137_v47, %v135_v49 }
 0x2ca   :  { %219 = vpush %v138_v50 }
 0x2fa   :  { %s218_s8 = spop %217 }
 0x2fb   :  { %v124_v51 = vstv %s218_s8  ;;  %s220_s9 = spop %219 }
 0x2fc   :  { %v125_v52 = vmul.f32 %v124_v51, %v96_v22  ;;  %v142_v53 = vstv %s220_s9 }
 0x2fd   :  { %232 = vrcp.f32 %v142_v53  ;;  %v154_v57 = vand.u32 2147483648, %v142_v53  ;;  %v152_v59 = vand.u32 2147483647, %v142_v53  ;;  %vm148_vm13 = vweird.f32 %v142_v53 }
 0x2fe   :  { %140 = vst.msk [vmem:[#allocation2] sm:$0x1] %vm100_vm6, %v125_v52 }
 0x2ff   :  { %171 = dma.vmem_to_hbm [thread:$0]  %s167_s29, 16, %s169_s7, [#allocation3]   ;;  %v155_v61 = vor.u32 1.1754944e-38, %v154_v57  ;;  %vm153_vm15 = vcmp.eq.f32.partialorder %v152_v59, 8.507059e+37 }
 0x303   :  { %v233_v54 = vpop.eup %232 }
 0x304   :  { %v144_v55 = vmul.f32 %v233_v54, %v142_v53  ;;  %vm149_vm12 = vweird.f32 %v233_v54 }
 0x305   :  { %vm150_vm14 = vmor %vm148_vm13, %vm149_vm12 }
 0x306   :  { %v145_v56 = vsub.f32 1.0, %v144_v55 }
 0x308   :  { %v146_v58 = vmul.f32 %v233_v54, %v145_v56 }
 0x30a   :  { %v147_v60 = vadd.f32 %v233_v54, %v146_v58 }
 0x30c   :  { %v151_v62 = vsel %vm150_vm14, %v233_v54, %v147_v60 }
 0x30d   :  { %v156_v63 = vsel %vm153_vm15, %v155_v61, %v151_v62 }
 0x30e   :  { %221 = vpush %v156_v63 }
 0x33f   :  { %s222_s14 = spop %221 }
 0x340   :  { %v158_v0 = vstv %s222_s14 }
 0x341   :  { %160 = vst.msk [vmem:[#allocation6] sm:$0x1] %vm159_vm0, %v158_v0 }
 0x342   :  { %193 = dma.vmem_to_hbm [thread:$0]  %s189_s10, 16, %s191_s13, [#allocation5]  }
 0x343   :  { %306 = dma.done.wait [#allocation3], 16  }
 0x344   :  { %307 = vsyncadd [#allocation3], 4294967280 }
 0x345   :  { %308 = dma.done.wait [#allocation5], 32  }
 0x346   :  { %309 = vsyncadd [#allocation5], 4294967264 }
 0x347   :  { %206 = vsyncpa [#allocation3], 1 }
 0x348   :  { %207 = vsyncpa [#allocation5], 1 }

// kernel: spectral_norm_conv_forward.3
= control target key start
LH: loop header
LB: loop body
LE: loop exit
PB: predicated region body
PF: predicated region fallthrough
CT: control target
= control target key end

     0   :  { %s1026_s17 = smov 0   ;;  %s1154_s0 = inlined_call_operand.<no memory space> [shape: f32[1,1], index: 0, kind: input, shape index: {}]   ;;  %s1155_s1 = inlined_call_operand.vmem [shape: bf16[9,8,4], index: 1, kind: input, shape index: {}]   ;;  %s1156_s2 = inlined_call_operand.vmem [shape: f32[8,1], index: 2, kind: input, shape index: {}]   ;;  %s1157_s3 = inlined_call_operand.vmem [shape: bf16[2,4,384], index: 3, kind: input, shape index: {}]   ;;  %s1158_s4 = inlined_call_operand.vmem [shape: f32[2,8,288], index: 4, kind: output, shape index: {}]  }
   0x1   :  { %9 = sst [smem:[#allocation2]] %s1154_s0 }
   0x2 LB: > { %s917_s18 = sadd.s32 4294967295, %s987_s17   ;;  %p921_p0 = scmp.ge.s32.totalorder %s987_s17, 1  ;;  %s987_s17 = sphi %s1026_s17, %s15_s17  }
   0x3   : > { %p163_p1 = scmp.lt.s32.totalorder %s987_s17, 3 }
   0x5   : > { %p164_p2 = pnand %p921_p0, %p163_p1 }
   0x6   : > { %p189_p3 = scmp.lt.s32.totalorder (!%p164_p2), %s917_s18, 1  ;;  %s989_s22 = smov (!%p164_p2), 127  }
   0x7   : > { %167 = sbr.rel (%p164_p2) target bundleno = 383 (0x17f), region = 36  ;;  %s990_s23 = smov (!%p164_p2), 126  }
   0x8   : > { %s991_s24 = smov (!%p164_p2), 110   ;;  %s992_s25 = smov (!%p164_p2), 109  }
   0x9   : > { %s993_s26 = smov (!%p164_p2), 108   ;;  %s994_s27 = smov (!%p164_p2), 92  }
   0xa   : > { %s995_s28 = smov (!%p164_p2), 91   ;;  %s996_s29 = smov (!%p164_p2), 90  }
   0xc   : > { %s1160_s18 = smov (!%p189_p3, %s917_s18), 1  ;;  %vm225_vm0 = vcmask 1041408   ;;  %v201_v36 = vld [vmem:[%s1155_s1] sm:$0xf]  ;;  %vm221_vm1 = vcmask 31744   ;;  %vm218_vm2 = vcmask 1039360  }
   0xd   : > { %s961_s0 = smul.u32 6, %s1160_s18  ;;  %v924_v44 = vld [vmem:[%s1155_s1 + $0x4] sm:$0xf]  ;;  %vm343_vm3 = vcmask 1031168   ;;  %v931_v48 = vld [vmem:[%s1155_s1 + $0x8] sm:$0xf] }
   0xe   : > { %vm417_vm4 = vcmask 900096   ;;  %vm491_vm5 = vcmask 891904   ;;  %vm565_vm6 = vcmask 883712   ;;  %vm639_vm7 = vcmask 752640  }
   0xf   : > { %s1040_s21 = scalar_lea.vmem %s1157_s3, %s961_s0  ;;  %vm713_vm8 = vcmask 744448   ;;  %vm787_vm9 = vcmask 736256   ;;  %vm860_vm10 = vcmask 261120  }
  0x10   : > { %v200_v0 = vld [vmem:[%s1040_s21] sm:$0x3f] }
  0x11   : > { %205 = vst [vmem:[#allocation1] ss:$4 sm:$0xff] %v200_v0  ;;  %v326_v4 = vld [vmem:[%s1040_s21] sm:$0x3f] }
  0x12   : > { %v400_v8 = vld [vmem:[%s1040_s21] sm:$0x3f] }
  0x13   : > { %v474_v12 = vld [vmem:[%s1040_s21] sm:$0x3f] }
  0x14   : > { %v548_v16 = vld [vmem:[%s1040_s21] sm:$0x3f] }
  0x15   : > { %v622_v20 = vld [vmem:[%s1040_s21] sm:$0x3f] }
  0x16   : > { %v696_v24 = vld [vmem:[%s1040_s21] sm:$0x3f] }
  0x17   : > { %v770_v28 = vld [vmem:[%s1040_s21] sm:$0x3f] }
  0x18   : > { %v210_v1 = vld.sshfl [vmem:[#allocation1 + $0x10] sm:$0xff pattern:$0x73625140]  ;;  %v208_v2 = vld.sshfl [vmem:[#allocation1 + $0x8] sm:$0xff pattern:$0x73625140] }
  0x19   : > { %216 = vrot.lane.b32.xlu0 %v210_v1, %s989_s22  ;;  %214 = vrot.lane.b32.xlu1 %v208_v2, %s989_s22  ;;  %v206_v3 = vld.sshfl [vmem:[#allocation1] sm:$0xff pattern:$0x73625140]  ;;  %v935_v1 = vld [vmem:[%s1155_s1 + $0xc] sm:$0xf] }
  0x1a   : > { %274 = vst [vmem:[#allocation1] ss:$4 sm:$0xff] %v200_v0 }
  0x21   : > { %212 = vrot.lane.b32.xlu0 %v206_v3, %s989_s22  ;;  %v1044_v5 = vld.sshfl [vmem:[#allocation1] sm:$0xff pattern:$0x73625140]  ;;  %v1046_v6 = vld.sshfl [vmem:[#allocation1 + $0x8] sm:$0xff pattern:$0x73625140] }
  0x22   : > { %v1048_v7 = vld.sshfl [vmem:[#allocation1 + $0x10] sm:$0xff pattern:$0x73625140]  ;;  %v281_v35 = vsel %vm225_vm0, %v1044_v5, 0  ;;  %v283_v51 = vsel %vm225_vm0, %v1046_v6, 0 }
  0x23   : > { %330 = vst [vmem:[#allocation1] ss:$4 sm:$0xff] %v326_v4  ;;  %294 = vmatpush.bf16.msra.mxu3 %v281_v35  ;;  %v285_v42 = vsel %vm225_vm0, %v1048_v7, 0 }
  0x26   : > { %928 = vmatmul.msk.bf16.vlgmr.msra.gmra.mxu3 %vm221_vm1, %v201_v36 }
  0x2a   : > { %v331_v9 = vld.sshfl [vmem:[#allocation1] sm:$0xff pattern:$0x73625140]  ;;  %v333_v10 = vld.sshfl [vmem:[#allocation1 + $0x8] sm:$0xff pattern:$0x73625140] }
  0x2b   : > { %337 = vrot.lane.b32.xlu1 %v331_v9, %s990_s23  ;;  %339 = vrot.lane.b32.xlu2 %v333_v10, %s990_s23  ;;  %v335_v11 = vld.sshfl [vmem:[#allocation1 + $0x10] sm:$0xff pattern:$0x73625140] }
  0x2c   : > { %404 = vst [vmem:[#allocation1] ss:$4 sm:$0xff] %v400_v8 }
  0x33   : > { %v409_v13 = vld.sshfl [vmem:[#allocation1 + $0x10] sm:$0xff pattern:$0x73625140]  ;;  %v405_v14 = vld.sshfl [vmem:[#allocation1] sm:$0xff pattern:$0x73625140]  ;;  %341 = vrot.lane.b32.xlu2 %v335_v11, %s990_s23 }
  0x34   : > { %415 = vrot.lane.b32.xlu1 %v409_v13, %s991_s24  ;;  %v407_v15 = vld.sshfl [vmem:[#allocation1 + $0x8] sm:$0xff pattern:$0x73625140] }
  0x35   : > { %413 = vrot.lane.b32.xlu0 %v407_v15, %s991_s24  ;;  %478 = vst [vmem:[#allocation1] ss:$4 sm:$0xff] %v474_v12  ;;  %v943_v15 = vld [vmem:[%s1155_s1 + $0x14] sm:$0xf] }
  0x3b   : > { %411 = vrot.lane.b32.xlu2 %v405_v14, %s991_s24 }
  0x3c   : > { %v483_v17 = vld.sshfl [vmem:[#allocation1 + $0x10] sm:$0xff pattern:$0x73625140]  ;;  %v481_v18 = vld.sshfl [vmem:[#allocation1 + $0x8] sm:$0xff pattern:$0x73625140] }
  0x3d   : > { %489 = vrot.lane.b32.xlu0 %v483_v17, %s992_s25  ;;  %v479_v19 = vld.sshfl [vmem:[#allocation1] sm:$0xff pattern:$0x73625140] }
  0x3e   : > { %485 = vrot.lane.b32.xlu1 %v479_v19, %s992_s25  ;;  %552 = vst [vmem:[#allocation1] ss:$4 sm:$0xff] %v548_v16  ;;  %v939_v16 = vld [vmem:[%s1155_s1 + $0x10] sm:$0xf] }
  0x43   : > { %487 = vrot.lane.b32.xlu2 %v481_v18, %s992_s25  ;;  %s844_s25 = sld [smem:[#allocation2]] }
  0x45   : > { %v555_v21 = vld.sshfl [vmem:[#allocation1 + $0x8] sm:$0xff pattern:$0x73625140]  ;;  %v553_v22 = vld.sshfl [vmem:[#allocation1] sm:$0xff pattern:$0x73625140] }
  0x46   : > { %561 = vrot.lane.b32.xlu1 %v555_v21, %s993_s26  ;;  %559 = vrot.lane.b32.xlu0 %v553_v22, %s993_s26  ;;  %v557_v23 = vld.sshfl [vmem:[#allocation1 + $0x10] sm:$0xff pattern:$0x73625140] }
  0x47   : > { %626 = vst [vmem:[#allocation1] ss:$4 sm:$0xff] %v622_v20 }
  0x4e   : > { %563 = vrot.lane.b32.xlu1 %v557_v23, %s993_s26  ;;  %v631_v25 = vld.sshfl [vmem:[#allocation1 + $0x10] sm:$0xff pattern:$0x73625140]  ;;  %v629_v26 = vld.sshfl [vmem:[#allocation1 + $0x8] sm:$0xff pattern:$0x73625140] }
  0x4f   : > { %635 = vrot.lane.b32.xlu0 %v629_v26, %s994_s27  ;;  %v627_v27 = vld.sshfl [vmem:[#allocation1] sm:$0xff pattern:$0x73625140]  ;;  %s962_s26 = smul.u32 24, %s1160_s18 }
  0x50   : > { %633 = vrot.lane.b32.xlu2 %v627_v27, %s994_s27  ;;  %700 = vst [vmem:[#allocation1] ss:$4 sm:$0xff] %v696_v24 }
  0x57   : > { %v701_v29 = vld.sshfl [vmem:[#allocation1] sm:$0xff pattern:$0x73625140]  ;;  %v705_v30 = vld.sshfl [vmem:[#allocation1 + $0x10] sm:$0xff pattern:$0x73625140] }
  0x58   : > { %711 = vrot.lane.b32.xlu1 %v705_v30, %s995_s28  ;;  %v703_v31 = vld.sshfl [vmem:[#allocation1 + $0x8] sm:$0xff pattern:$0x73625140]  ;;  %637 = vrot.lane.b32.xlu2 %v631_v25, %s994_s27 }
  0x59   : > { %709 = vrot.lane.b32.xlu0 %v703_v31, %s995_s28  ;;  %774 = vst [vmem:[#allocation1] ss:$4 sm:$0xff] %v770_v28 }
  0x60   : > { %v779_v32 = vld.sshfl [vmem:[#allocation1 + $0x10] sm:$0xff pattern:$0x73625140]  ;;  %v775_v33 = vld.sshfl [vmem:[#allocation1] sm:$0xff pattern:$0x73625140]  ;;  %707 = vrot.lane.b32.xlu2 %v701_v29, %s995_s28 }
  0x61   : > { %785 = vrot.lane.b32.xlu0 %v779_v32, %s996_s29  ;;  %781 = vrot.lane.b32.xlu1 %v775_v33, %s996_s29  ;;  %v777_v34 = vld.sshfl [vmem:[#allocation1 + $0x8] sm:$0xff pattern:$0x73625140] }
  0x68   : > { %783 = vrot.lane.b32.xlu2 %v777_v34, %s996_s29  ;;  %v947_v34 = vld [vmem:[%s1155_s1 + $0x18] sm:$0xf]  ;;  %s198_s29 = scalar_lea.vmem %s1158_s4, %s962_s26 }
  0x85   : > { %v340_v37 = vpop.permute.xlu2 %339 }
  0x8b   : > { %v217_v38 = vpop.permute.xlu0 %216  ;;  %v215_v39 = vpop.permute.xlu1 %214 }
  0x8c   : > { %v220_v40 = vsel %vm218_vm2, %v215_v39, %v217_v38  ;;  %v233_v41 = vsel %vm225_vm0, %v217_v38, 0 }
  0x8d   : > { %v230_v43 = vsel %vm225_vm0, %v220_v40, 0  ;;  %268 = vmatpush.bf16.msra.mxu2 %v233_v41  ;;  %v342_v45 = vpop.permute.xlu2 %341 }
  0x8e   : > { %255 = vmatpush.bf16.msra.mxu1 %v230_v43  ;;  %v345_v46 = vsel %vm343_vm3, %v340_v37, %v342_v45  ;;  %v356_v53 = vsel %vm225_vm0, %v342_v45, 0  ;;  %v849_v45 = vld [vmem:[%s1156_s2] sm:$0xff] }
  0x8f   : > { %v353_v47 = vsel %vm225_vm0, %v345_v46, 0  ;;  %v997_v46 = vmov 0  }
  0x90   : > { %927 = vmatmul.msk.bf16.vlgmr.msra.gmra.mxu2 %vm221_vm1, %v924_v44  ;;  %378 = vmatpush.bf16.msrb.mxu3 %v353_v47  ;;  %v951_v47 = vld [vmem:[%s1155_s1 + $0x1c] sm:$0xf] }
  0x91   : > { %926 = vmatmul.msk.bf16.vlgmr.msra.gmra.mxu1 %vm221_vm1, %v924_v44  ;;  %980 = vset.pattern.permute.xlu0 %v997_v46 }
  0x92   : > { %320 = vmatpush.bf16.msrb.mxu1 %v285_v42  ;;  %852 = vperm.xlu0 %980, %v849_v45  }
  0x93   : > { %v213_v49 = vpop.permute.xlu0 %212  ;;  %933 = vmatmul.msk.bf16.vlgmr.msrb.gmra.mxu3 %vm221_vm1, %v931_v48 }
  0x94   : > { %v219_v50 = vsel %vm218_vm2, %v213_v49, %v215_v39 }
  0x95   : > { %v227_v52 = vsel %vm225_vm0, %v219_v50, 0  ;;  %v412_v57 = vpop.permute.xlu2 %411 }
  0x96   : > { %242 = vmatpush.bf16.msra.mxu0 %v227_v52 }
  0x99   : > { %925 = vmatmul.msk.bf16.vlgmr.msra.gmra.mxu0 %vm221_vm1, %v924_v44 }
  0x9a   : > { %307 = vmatpush.bf16.msrb.mxu0 %v283_v51 }
  0x9d   : > { %v338_v54 = vpop.permute.xlu1 %337  ;;  %v488_v2 = vpop.permute.xlu2 %487 }
  0x9e   : > { %391 = vmatpush.bf16.msra.mxu0 %v356_v53  ;;  %v344_v55 = vsel %vm343_vm3, %v338_v54, %v340_v37 }
  0x9f   : > { %v350_v56 = vsel %vm225_vm0, %v344_v55, 0 }
  0xa0   : > { %365 = vmatpush.bf16.msrb.mxu2 %v350_v56 }
  0xa1   : > { %930 = vmatmul.msk.bf16.vlgmr.msrb.gmra.mxu1 %vm221_vm1, %v201_v36 }
  0xa3   : > { %932 = vmatmul.msk.bf16.vlgmr.msrb.gmra.mxu2 %vm221_vm1, %v931_v48 }
  0xa6   : > { %v416_v58 = vpop.permute.xlu1 %415 }
  0xa7   : > { %v430_v59 = vsel %vm225_vm0, %v416_v58, 0  ;;  %v414_v60 = vpop.permute.xlu0 %413 }
  0xa8   : > { %v419_v61 = vsel %vm417_vm4, %v414_v60, %v416_v58  ;;  %v418_v62 = vsel %vm417_vm4, %v412_v57, %v414_v60  ;;  %465 = vmatpush.bf16.msra.mxu3 %v430_v59 }
  0xa9   : > { %929 = vmatmul.msk.bf16.vlgmr.msrb.gmra.mxu0 %vm221_vm1, %v201_v36  ;;  %v427_v63 = vsel %vm225_vm0, %v419_v61, 0  ;;  %v424_v0 = vsel %vm225_vm0, %v418_v62, 0  ;;  %v296_v49 = vpop.f32.mrf.mxu3 }
  0xaa   : > { %439 = vmatpush.bf16.msra.mxu1 %v424_v0  ;;  %452 = vmatpush.bf16.msra.mxu2 %v427_v63  ;;  %v634_v10 = vpop.permute.xlu2 %633 }
  0xab   : > { %938 = vmatmul.msk.bf16.vlgmr.msra.gmra.mxu3 %vm221_vm1, %v935_v1 }
  0xaf   : > { %v490_v3 = vpop.permute.xlu0 %489 }
  0xb0   : > { %v504_v4 = vsel %vm225_vm0, %v490_v3, 0  ;;  %v486_v5 = vpop.permute.xlu1 %485  ;;  %v493_v6 = vsel %vm491_vm5, %v488_v2, %v490_v3 }
  0xb1   : > { %936 = vmatmul.msk.bf16.vlgmr.msra.gmra.mxu1 %vm221_vm1, %v935_v1  ;;  %v492_v7 = vsel %vm491_vm5, %v486_v5, %v488_v2  ;;  %v501_v8 = vsel %vm225_vm0, %v493_v6, 0  ;;  %539 = vmatpush.bf16.msrb.mxu2 %v504_v4  ;;  %v298_v50 = vpop.f32.mrf.mxu3 }
  0xb2   : > { %v498_v9 = vsel %vm225_vm0, %v492_v7, 0  ;;  %526 = vmatpush.bf16.msrb.mxu1 %v501_v8  ;;  %v638_v17 = vpop.permute.xlu2 %637  ;;  %v845_v50 = vstv %s844_s25 }
  0xb3   : > { %937 = vmatmul.msk.bf16.vlgmr.msra.gmra.mxu2 %vm221_vm1, %v935_v1  ;;  %513 = vmatpush.bf16.msrb.mxu0 %v498_v9  ;;  %v652_v27 = vsel %vm225_vm0, %v638_v17, 0 }
  0xb8   : > { %v562_v11 = vpop.permute.xlu1 %561  ;;  %v560_v12 = vpop.permute.xlu0 %559 }
  0xb9   : > { %934 = vmatmul.msk.bf16.vlgmr.msra.gmra.mxu0 %vm221_vm1, %v931_v48  ;;  %v566_v13 = vsel %vm565_vm6, %v560_v12, %v562_v11  ;;  %v955_v48 = vld [vmem:[%s1155_s1 + $0x20] sm:$0xf] }
  0xba   : > { %v572_v14 = vsel %vm225_vm0, %v566_v13, 0  ;;  %v708_v28 = vpop.permute.xlu2 %707 }
  0xbb   : > { %587 = vmatpush.bf16.msrb.mxu3 %v572_v14 }
  0xbe   : > { %944 = vmatmul.msk.bf16.vlgmr.msrb.gmra.mxu3 %vm221_vm1, %v943_v15 }
  0xc0   : > { %v564_v18 = vpop.permute.xlu1 %563 }
  0xc1   : > { %941 = vmatmul.msk.bf16.vlgmr.msrb.gmra.mxu1 %vm221_vm1, %v939_v16  ;;  %v567_v19 = vsel %vm565_vm6, %v562_v11, %v564_v18  ;;  %v578_v20 = vsel %vm225_vm0, %v564_v18, 0  ;;  %v636_v21 = vpop.permute.xlu0 %635 }
  0xc2   : > { %v575_v22 = vsel %vm225_vm0, %v567_v19, 0  ;;  %v640_v23 = vsel %vm639_vm7, %v634_v10, %v636_v21  ;;  %v641_v24 = vsel %vm639_vm7, %v636_v21, %v638_v17  ;;  %613 = vmatpush.bf16.msra.mxu1 %v578_v20  ;;  %v784_v37 = vpop.permute.xlu2 %783 }
  0xc3   : > { %942 = vmatmul.msk.bf16.vlgmr.msrb.gmra.mxu2 %vm221_vm1, %v939_v16  ;;  %v646_v25 = vsel %vm225_vm0, %v640_v23, 0  ;;  %v649_v26 = vsel %vm225_vm0, %v641_v24, 0  ;;  %600 = vmatpush.bf16.msra.mxu0 %v575_v22 }
  0xc4   : > { %661 = vmatpush.bf16.msra.mxu2 %v646_v25  ;;  %674 = vmatpush.bf16.msra.mxu3 %v649_v26 }
  0xc9   : > { %940 = vmatmul.msk.bf16.vlgmr.msrb.gmra.mxu0 %vm221_vm1, %v939_v16 }
  0xca   : > { %687 = vmatpush.bf16.msrb.mxu0 %v652_v27  ;;  %v712_v29 = vpop.permute.xlu1 %711 }
  0xcb   : > { %v726_v30 = vsel %vm225_vm0, %v712_v29, 0  ;;  %v710_v31 = vpop.permute.xlu0 %709 }
  0xcc   : > { %v715_v32 = vsel %vm713_vm8, %v710_v31, %v712_v29  ;;  %v714_v33 = vsel %vm713_vm8, %v708_v28, %v710_v31  ;;  %761 = vmatpush.bf16.msrb.mxu3 %v726_v30 }
  0xcd   : > { %v723_v35 = vsel %vm225_vm0, %v715_v32, 0  ;;  %v720_v36 = vsel %vm225_vm0, %v714_v33, 0 }
  0xce   : > { %949 = vmatmul.msk.bf16.vlgmr.msra.gmra.mxu3 %vm221_vm1, %v947_v34  ;;  %735 = vmatpush.bf16.msrb.mxu1 %v720_v36 }
  0xcf   : > { %748 = vmatpush.bf16.msrb.mxu2 %v723_v35 }
  0xd1   : > { %946 = vmatmul.msk.bf16.vlgmr.msra.gmra.mxu1 %vm221_vm1, %v943_v15 }
  0xd3   : > { %948 = vmatmul.msk.bf16.vlgmr.msra.gmra.mxu2 %vm221_vm1, %v947_v34  ;;  %v786_v38 = vpop.permute.xlu0 %785  ;;  %v782_v39 = vpop.permute.xlu1 %781 }
  0xd4   : > { %v800_v40 = vsel %vm225_vm0, %v786_v38, 0  ;;  %v789_v41 = vsel %vm787_vm9, %v784_v37, %v786_v38  ;;  %v788_v42 = vsel %vm787_vm9, %v782_v39, %v784_v37 }
  0xd5   : > { %v797_v43 = vsel %vm225_vm0, %v789_v41, 0  ;;  %835 = vmatpush.bf16.msra.mxu2 %v800_v40  ;;  %v794_v44 = vsel %vm225_vm0, %v788_v42, 0 }
  0xd6   : > { %822 = vmatpush.bf16.msra.mxu1 %v797_v43 }
  0xd9   : > { %945 = vmatmul.msk.bf16.vlgmr.msra.gmra.mxu0 %vm221_vm1, %v943_v15 }
  0xda   : > { %809 = vmatpush.bf16.msra.mxu0 %v794_v44 }
  0xde   : > { %954 = vmatmul.msk.bf16.vlgmr.msrb.gmra.mxu3 %vm221_vm1, %v951_v47 }
  0xe1   : > { %952 = vmatmul.msk.bf16.vlgmr.msrb.gmra.mxu1 %vm221_vm1, %v951_v47 }
  0xe3   : > { %953 = vmatmul.msk.bf16.vlgmr.msrb.gmra.mxu2 %vm221_vm1, %v951_v47 }
  0xe9   : > { %950 = vmatmul.msk.bf16.vlgmr.msrb.gmra.mxu0 %vm221_vm1, %v947_v34 }
  0xf1   : > { %957 = vmatmul.msk.bf16.vlgmr.msra.gmra.mxu1 %vm221_vm1, %v955_v48 }
  0xf3   : > { %958 = vmatmul.msk.bf16.vlgmr.msra.gmra.mxu2 %vm221_vm1, %v955_v48 }
  0xf9   : > { %956 = vmatmul.msk.bf16.vlgmr.msra.gmra.mxu0 %vm221_vm1, %v955_v48 }
 0x10e   : > { %v257_v51 = vpop.f32.mrf.mxu1 }
 0x113   : > { %v270_v52 = vpop.f32.mrf.mxu2 }
 0x116   : > { %v244_v53 = vpop.f32.mrf.mxu0  ;;  %v259_v54 = vpop.f32.mrf.mxu1 }
 0x117   : > { %v297_v55 = vadd.f32 %v296_v49, %v244_v53  ;;  %v380_v56 = vpop.f32.mrf.mxu3  ;;  %v853_v54 = vpop.permute.xlu0 %852 }
 0x11b   : > { %v272_v57 = vpop.f32.mrf.mxu2 }
 0x11e   : > { %v246_v58 = vpop.f32.mrf.mxu0  ;;  %v322_v59 = vpop.f32.mrf.mxu1 }
 0x11f   : > { %v323_v60 = vadd.f32 %v322_v59, %v270_v52  ;;  %v382_v61 = vpop.f32.mrf.mxu3 }
 0x126   : > { %v367_v62 = vpop.f32.mrf.mxu2  ;;  %v309_v63 = vpop.f32.mrf.mxu0 }
 0x127   : > { %v397_v0 = vadd.f32 %v367_v62, %v297_v55  ;;  %v310_v1 = vadd.f32 %v309_v63, %v257_v51  ;;  %v324_v2 = vpop.f32.mrf.mxu1 }
 0x129   : > { %v398_v3 = vadd.f32 %v380_v56, %v310_v1 }
 0x12e   : > { %v369_v4 = vpop.f32.mrf.mxu2  ;;  %v311_v5 = vpop.f32.mrf.mxu0 }
 0x12f   : > { %v441_v6 = vpop.f32.mrf.mxu1  ;;  %v467_v7 = vpop.f32.mrf.mxu3 }
 0x130   : > { %v471_v40 = vadd.f32 %v441_v6, %v397_v0 }
 0x136   : > { %v454_v8 = vpop.f32.mrf.mxu2  ;;  %v393_v9 = vpop.f32.mrf.mxu0 }
 0x137   : > { %v443_v10 = vpop.f32.mrf.mxu1  ;;  %v469_v11 = vpop.f32.mrf.mxu3  ;;  %v472_v32 = vadd.f32 %v454_v8, %v398_v3  ;;  %v399_v36 = vadd.f32 %v393_v9, %v323_v60 }
 0x139   : > { %v473_v41 = vadd.f32 %v467_v7, %v399_v36 }
 0x13e   : > { %v456_v12 = vpop.f32.mrf.mxu2  ;;  %v395_v13 = vpop.f32.mrf.mxu0 }
 0x13f   : > { %v528_v14 = vpop.f32.mrf.mxu1 }
 0x140   : > { %v546_v33 = vadd.f32 %v528_v14, %v472_v32 }
 0x141   : > { %v589_v15 = vpop.f32.mrf.mxu3 }
 0x146   : > { %v541_v16 = vpop.f32.mrf.mxu2  ;;  %v515_v17 = vpop.f32.mrf.mxu0 }
 0x147   : > { %v530_v18 = vpop.f32.mrf.mxu1  ;;  %v547_v43 = vadd.f32 %v541_v16, %v473_v41  ;;  %v545_v44 = vadd.f32 %v515_v17, %v471_v40 }
 0x149   : > { %v591_v19 = vpop.f32.mrf.mxu3  ;;  %v619_v52 = vadd.f32 %v589_v15, %v545_v44 }
 0x14e   : > { %v543_v20 = vpop.f32.mrf.mxu2  ;;  %v517_v21 = vpop.f32.mrf.mxu0 }
 0x14f   : > { %v615_v22 = vpop.f32.mrf.mxu1 }
 0x150   : > { %v621_v48 = vadd.f32 %v615_v22, %v547_v43 }
 0x151   : > { %v676_v23 = vpop.f32.mrf.mxu3 }
 0x156   : > { %v663_v24 = vpop.f32.mrf.mxu2  ;;  %v602_v25 = vpop.f32.mrf.mxu0 }
 0x157   : > { %v617_v26 = vpop.f32.mrf.mxu1  ;;  %v620_v38 = vadd.f32 %v602_v25, %v546_v33  ;;  %v693_v56 = vadd.f32 %v663_v24, %v619_v52 }
 0x159   : > { %v678_v27 = vpop.f32.mrf.mxu3  ;;  %v694_v42 = vadd.f32 %v676_v23, %v620_v38 }
 0x15e   : > { %v665_v28 = vpop.f32.mrf.mxu2  ;;  %v604_v29 = vpop.f32.mrf.mxu0 }
 0x15f   : > { %v737_v30 = vpop.f32.mrf.mxu1 }
 0x160   : > { %v767_v58 = vadd.f32 %v737_v30, %v693_v56 }
 0x161   : > { %v763_v31 = vpop.f32.mrf.mxu3 }
 0x166   : > { %v750_v34 = vpop.f32.mrf.mxu2  ;;  %v689_v35 = vpop.f32.mrf.mxu0 }
 0x167   : > { %v739_v37 = vpop.f32.mrf.mxu1  ;;  %v768_v45 = vadd.f32 %v750_v34, %v694_v42  ;;  %v695_v53 = vadd.f32 %v689_v35, %v621_v48 }
 0x169   : > { %v765_v39 = vpop.f32.mrf.mxu3  ;;  %v769_v59 = vadd.f32 %v763_v31, %v695_v53 }
 0x16e   : > { %v752_v46 = vpop.f32.mrf.mxu2  ;;  %v691_v47 = vpop.f32.mrf.mxu0 }
 0x16f   : > { %v824_v49 = vpop.f32.mrf.mxu1 }
 0x170   : > { %v842_v51 = vadd.f32 %v824_v49, %v768_v45 }
 0x172   : > { %v847_v55 = vmul.f32 %v845_v50, %v842_v51 }
 0x174   : > { %v856_v57 = vadd.f32 %v853_v54, %v847_v55 }
 0x176   : > { %859 = vst [vmem:[%s198_s29 + $0x8] sm:$0xff] %v856_v57  ;;  %v837_v60 = vpop.f32.mrf.mxu2  ;;  %v811_v61 = vpop.f32.mrf.mxu0 }
 0x177   : > { %v843_v62 = vadd.f32 %v837_v60, %v769_v59  ;;  %v841_v63 = vadd.f32 %v811_v61, %v767_v58  ;;  %v826_v0 = vpop.f32.mrf.mxu1 }
 0x179   : > { %v848_v1 = vmul.f32 %v845_v50, %v843_v62  ;;  %v846_v2 = vmul.f32 %v845_v50, %v841_v63 }
 0x17b   : > { %v857_v3 = vadd.f32 %v853_v54, %v848_v1  ;;  %v855_v4 = vadd.f32 %v853_v54, %v846_v2 }
 0x17d   : > { %861 = vst.msk [vmem:[%s198_s29 + $0x10] sm:$0xff] %vm860_vm10, %v857_v3 }
 0x17e   : > { %858 = vst [vmem:[%s198_s29] sm:$0xff] %v855_v4  ;;  %v813_v5 = vpop.f32.mrf.mxu0  ;;  %v839_v6 = vpop.f32.mrf.mxu2 }
 0x17f PF: > { %s15_s17 = sadd.s32 1, %s987_s17  }
 0x180   : > { %p12_p4 = scmp.ge.s32.totalorder %s15_s17, 4  }
 0x182   :  { %14 = sbr.rel (!%p12_p4) target bundleno = 2 (0x2), region = 74 }

</bundles_post_ra>
